<compile_context>
chip_gen: v6e
topology: v6e:2x2x1
jax: 0.10.0
libtpu: 0.0.40
codegen_flags: <defaults>
</compile_context>

<pallas_src>
import functools

import jax
import jax.numpy as jnp
from jax.experimental import pallas as pl
from jax.experimental.pallas import tpu as pltpu


def _round_up(x, m):
    return ((x + m - 1) // m) * m


def _sepconv_kernel(x_ref, dw_ref, pw_ref, o_ref, *, K, stride, Ws, SP_pad):
    """Fused depthwise (KxK, stride, VALID) + pointwise (1x1) conv.

    Layout: channels on sublanes / leading axes, flattened spatial on lanes.

    x_ref : (B, s, s, C_in, FLAT_pad)  stride-phase de-interleaved input,
                                       spatial flattened row-major (stride Ws)
    dw_ref: (K*K, C_in, 1)             depthwise filters, tap-major
    pw_ref: (C_out_pad, C_in)          pointwise filters, sublane-padded C_out
    o_ref : (B, C_out_pad, SP_pad)     NC(HW)-flattened, lane-padded output
    """
    s = stride
    B = x_ref.shape[0]
    C_in = x_ref.shape[3]

    # Weights loaded + cast once (outside the unrolled tap loop).
    dw = dw_ref[...].astype(jnp.float32)          # (K*K, C_in, 1)
    pw = pw_ref[...].astype(jnp.float32)          # (C_out_pad, C_in)

    # ---- depthwise: K*K unit-stride, lane-dense broadcast-FMAs on the VPU ----
    acc = jnp.zeros((B, C_in, SP_pad), jnp.float32)
    for kh in range(K):
        for kw in range(K):
            rph, roff = kh % s, kh // s           # row phase / row offset
            cph, coff = kw % s, kw // s           # col phase / col offset
            off = roff * Ws + coff                # static flat offset
            patch = x_ref[:, rph, cph, :, pl.ds(off, SP_pad)]   # (B, C_in, SP_pad)
            w_tap = dw[kh * K + kw]                              # (C_in, 1)
            acc = acc + patch.astype(jnp.float32) * w_tap

    # ---- pointwise: one lane-dense MXU matmul per image, unmasked stores ----
    for b in range(B):
        o_ref[b] = jnp.dot(pw, acc[b],
                           preferred_element_type=jnp.float32).astype(o_ref.dtype)


def separable_conv(x_nchw, dw_weight, pw_weight, *, stride):
    """x_nchw: (N, C_in, H, W) f32
       dw_weight: (C_in, 1, K, K)    (PyTorch depthwise layout)
       pw_weight: (C_out, C_in, 1, 1)
       returns (N, C_out, OH, OW) -- identical semantics to the PyTorch module."""
    N, C_in, H, W = x_nchw.shape
    K = dw_weight.shape[-1]
    C_out = pw_weight.shape[0]
    s = stride
    OH = (H - K) // s + 1
    OW = (W - K) // s + 1

    Hs, Ws = -(-H // s), -(-W // s)               # ceil division
    Hp, Wp = Hs * s, Ws * s
    max_off = ((K - 1) // s) * Ws + (K - 1) // s  # largest tap flat offset

    SP_pad = _round_up(OH * Ws, 128)              # lane-dense output spatial
    FLAT_pad = _round_up(max_off + SP_pad, 128)   # every tap load stays in-bounds
    C_out_pad = _round_up(C_out, 8)               # sublane-dense output rows

    B_TILE = min(N, 8)                            # images per grid step
    N_pad = _round_up(N, B_TILE)

    # ---- wrapper-side layout plumbing ---------------------------------------
    x = x_nchw
    if (Hp, Wp) != (H, W):                        # pad never read by valid taps
        x = jnp.pad(x, ((0, 0), (0, 0), (0, Hp - H), (0, Wp - W)))
    # de-interleave stride phases: x_d[n, ph, pw, c, i, j] == x[n, c, i*s+ph, j*s+pw]
    x_d = x.reshape(N, C_in, Hs, s, Ws, s).transpose(0, 3, 5, 1, 2, 4)
    x_flat = x_d.reshape(N, s, s, C_in, Hs * Ws)
    x_flat = jnp.pad(
        x_flat,
        ((0, N_pad - N), (0, 0), (0, 0), (0, 0), (0, FLAT_pad - Hs * Ws)))

    dw = jnp.transpose(dw_weight[:, 0, :, :].reshape(C_in, K * K), (1, 0))[..., None]
    pw = pw_weight[:, :, 0, 0]                                   # (C_out, C_in)
    pw = jnp.pad(pw, ((0, C_out_pad - C_out), (0, 0)))

    kernel = functools.partial(_sepconv_kernel, K=K, stride=s, Ws=Ws, SP_pad=SP_pad)

    itemsize = jnp.dtype(x_flat.dtype).itemsize
    in_bytes = B_TILE * s * s * C_in * FLAT_pad * itemsize
    out_bytes = B_TILE * C_out_pad * SP_pad * itemsize
    w_bytes = (K * K * C_in + C_out_pad * C_in) * itemsize
    vmem_limit = int(2 * (in_bytes + out_bytes) + w_bytes + (8 << 20))
    vmem_limit = min(max(vmem_limit, 16 << 20), 64 << 20)

    out = pl.pallas_call(
        kernel,
        out_shape=jax.ShapeDtypeStruct((N_pad, C_out_pad, SP_pad), x_nchw.dtype),
        grid_spec=pltpu.PrefetchScalarGridSpec(
            num_scalar_prefetch=0,
            grid=(N_pad // B_TILE,),
            in_specs=[
                pl.BlockSpec((B_TILE, s, s, C_in, FLAT_pad),
                             lambda n: (n, 0, 0, 0, 0)),
                pl.BlockSpec((K * K, C_in, 1), lambda n: (0, 0, 0)),
                pl.BlockSpec((C_out_pad, C_in), lambda n: (0, 0)),
            ],
            out_specs=pl.BlockSpec((B_TILE, C_out_pad, SP_pad),
                                   lambda n: (n, 0, 0)),
        ),
        compiler_params=pltpu.CompilerParams(
            dimension_semantics=("parallel",),
            vmem_limit_bytes=vmem_limit),
    )(x_flat, dw, pw)

    # Drop batch / channel / lane padding. Output is already NCHW-ordered:
    # flat spatial index == oh * Ws + ow (columns ow >= OW are padding).
    out = out[:N, :C_out, :OH * Ws].reshape(N, C_out, OH, Ws)[..., :OW]
    return out


def _reference(x_nchw, dw_weight, pw_weight, *, stride):
    """Plain-JAX reference matching torch.nn.Conv2d semantics."""
    C_in = x_nchw.shape[1]
    d = jax.lax.conv_general_dilated(
        x_nchw, dw_weight, window_strides=(stride, stride), padding="VALID",
        dimension_numbers=("NCHW", "OIHW", "NCHW"), feature_group_count=C_in)
    p = jax.lax.conv_general_dilated(
        d, pw_weight, window_strides=(1, 1), padding="VALID",
        dimension_numbers=("NCHW", "OIHW", "NCHW"))
    return p


if __name__ == "__main__":
    # module config (matches SeparableConv(in=4, out=8, kernel=3, stride=2))
    in_channels, out_channels, kernel_size, stride = 4, 8, 3, 2
    N, H, W = 2, 16, 16

    key = jax.random.PRNGKey(0)
    k_x, k_dw, k_pw = jax.random.split(key, 3)

    x = jax.random.normal(k_x, (N, in_channels, H, W), dtype=jnp.float32)
    dw_weight = jax.random.normal(
        k_dw, (in_channels, 1, kernel_size, kernel_size), dtype=jnp.float32) * 0.1
    pw_weight = jax.random.normal(
        k_pw, (out_channels, in_channels, 1, 1), dtype=jnp.float32) * 0.1

    out = separable_conv(x, dw_weight, pw_weight, stride=stride)
    out = jax.block_until_ready(out)

    ref = _reference(x, dw_weight, pw_weight, stride=stride)
    if not jnp.allclose(out, ref, atol=1e-5, rtol=1e-5):
        raise AssertionError("Pallas SeparableConv does not match reference")

    print("KERNEL_OK")
</pallas_src>

<mosaic_0001>
module attributes {stable_mosaic.version = 11 : i64} {
  func.func @_sepconv_kernel(%arg0: i32, %arg1: memref<2x2x2x4x256xf32, #tpu.memory_space<vmem>>, %arg2: memref<9x4x1xf32, #tpu.memory_space<vmem>>, %arg3: memref<8x4xf32, #tpu.memory_space<vmem>>, %arg4: memref<2x8x128xf32, #tpu.memory_space<vmem>>) attributes {dimension_semantics = [#tpu.dimension_semantics<parallel>], iteration_bounds = array<i64: 1>, scalar_prefetch = 0 : i64, scratch_operands = 0 : i64, tpu.core_type = #tpu.core_type<tc>, window_params = [{transform_indices = @transform_0, window_bounds = array<i64: 2, 2, 2, 4, 256>}, {pipeline_mode = #tpu.pipeline_mode<synchronous>, transform_indices = @transform_1, window_bounds = array<i64: 9, 4, 1>}, {pipeline_mode = #tpu.pipeline_mode<synchronous>, transform_indices = @transform_2, window_bounds = array<i64: 8, 4>}, {transform_indices = @transform_3, window_bounds = array<i64: 2, 8, 128>}]} {
    %c0 = arith.constant 0 : index
    %c0_0 = arith.constant 0 : index
    %c0_1 = arith.constant 0 : index
    %0 = vector.load %arg2[%c0, %c0_0, %c0_1] : memref<9x4x1xf32, #tpu.memory_space<vmem>>, vector<9x4x1xf32>
    %c0_2 = arith.constant 0 : index
    %c0_3 = arith.constant 0 : index
    %1 = vector.load %arg3[%c0_2, %c0_3] : memref<8x4xf32, #tpu.memory_space<vmem>>, vector<8x4xf32>
    %cst = arith.constant 0.000000e+00 : f32
    %2 = vector.broadcast %cst : f32 to vector<2x4x128xf32>
    %c0_4 = arith.constant 0 : index
    %c0_5 = arith.constant 0 : index
    %c0_6 = arith.constant 0 : index
    %c0_7 = arith.constant 0 : index
    %c0_8 = arith.constant 0 : index
    %3 = vector.load %arg1[%c0_4, %c0_5, %c0_6, %c0_7, %c0_8] : memref<2x2x2x4x256xf32, #tpu.memory_space<vmem>>, vector<2x1x1x4x128xf32>
    %4 = vector.shape_cast %3 : vector<2x1x1x4x128xf32> to vector<2x4x128xf32>
    %5 = vector.extract_strided_slice %0 {offsets = [0, 0, 0], sizes = [1, 4, 1], strides = [1, 1, 1]} : vector<9x4x1xf32> to vector<1x4x1xf32>
    %6 = vector.shape_cast %5 : vector<1x4x1xf32> to vector<4x1xf32>
    %7 = vector.shape_cast %6 : vector<4x1xf32> to vector<1x4x1xf32>
    %8 = vector.broadcast %7 : vector<1x4x1xf32> to vector<2x4x128xf32>
    %9 = arith.mulf %4, %8 : vector<2x4x128xf32>
    %10 = arith.addf %2, %9 : vector<2x4x128xf32>
    %c0_9 = arith.constant 0 : index
    %c0_10 = arith.constant 0 : index
    %c1 = arith.constant 1 : index
    %c0_11 = arith.constant 0 : index
    %c0_12 = arith.constant 0 : index
    %11 = vector.load %arg1[%c0_9, %c0_10, %c1, %c0_11, %c0_12] : memref<2x2x2x4x256xf32, #tpu.memory_space<vmem>>, vector<2x1x1x4x128xf32>
    %12 = vector.shape_cast %11 : vector<2x1x1x4x128xf32> to vector<2x4x128xf32>
    %13 = vector.extract_strided_slice %0 {offsets = [1, 0, 0], sizes = [1, 4, 1], strides = [1, 1, 1]} : vector<9x4x1xf32> to vector<1x4x1xf32>
    %14 = vector.shape_cast %13 : vector<1x4x1xf32> to vector<4x1xf32>
    %15 = vector.shape_cast %14 : vector<4x1xf32> to vector<1x4x1xf32>
    %16 = vector.broadcast %15 : vector<1x4x1xf32> to vector<2x4x128xf32>
    %17 = arith.mulf %12, %16 : vector<2x4x128xf32>
    %18 = arith.addf %10, %17 : vector<2x4x128xf32>
    %c0_13 = arith.constant 0 : index
    %c0_14 = arith.constant 0 : index
    %c0_15 = arith.constant 0 : index
    %c0_16 = arith.constant 0 : index
    %c1_17 = arith.constant 1 : index
    %19 = vector.load %arg1[%c0_13, %c0_14, %c0_15, %c0_16, %c1_17] : memref<2x2x2x4x256xf32, #tpu.memory_space<vmem>>, vector<2x1x1x4x128xf32>
    %20 = vector.shape_cast %19 : vector<2x1x1x4x128xf32> to vector<2x4x128xf32>
    %21 = vector.extract_strided_slice %0 {offsets = [2, 0, 0], sizes = [1, 4, 1], strides = [1, 1, 1]} : vector<9x4x1xf32> to vector<1x4x1xf32>
    %22 = vector.shape_cast %21 : vector<1x4x1xf32> to vector<4x1xf32>
    %23 = vector.shape_cast %22 : vector<4x1xf32> to vector<1x4x1xf32>
    %24 = vector.broadcast %23 : vector<1x4x1xf32> to vector<2x4x128xf32>
    %25 = arith.mulf %20, %24 : vector<2x4x128xf32>
    %26 = arith.addf %18, %25 : vector<2x4x128xf32>
    %c0_18 = arith.constant 0 : index
    %c1_19 = arith.constant 1 : index
    %c0_20 = arith.constant 0 : index
    %c0_21 = arith.constant 0 : index
    %c0_22 = arith.constant 0 : index
    %27 = vector.load %arg1[%c0_18, %c1_19, %c0_20, %c0_21, %c0_22] : memref<2x2x2x4x256xf32, #tpu.memory_space<vmem>>, vector<2x1x1x4x128xf32>
    %28 = vector.shape_cast %27 : vector<2x1x1x4x128xf32> to vector<2x4x128xf32>
    %29 = vector.extract_strided_slice %0 {offsets = [3, 0, 0], sizes = [1, 4, 1], strides = [1, 1, 1]} : vector<9x4x1xf32> to vector<1x4x1xf32>
    %30 = vector.shape_cast %29 : vector<1x4x1xf32> to vector<4x1xf32>
    %31 = vector.shape_cast %30 : vector<4x1xf32> to vector<1x4x1xf32>
    %32 = vector.broadcast %31 : vector<1x4x1xf32> to vector<2x4x128xf32>
    %33 = arith.mulf %28, %32 : vector<2x4x128xf32>
    %34 = arith.addf %26, %33 : vector<2x4x128xf32>
    %c0_23 = arith.constant 0 : index
    %c1_24 = arith.constant 1 : index
    %c1_25 = arith.constant 1 : index
    %c0_26 = arith.constant 0 : index
    %c0_27 = arith.constant 0 : index
    %35 = vector.load %arg1[%c0_23, %c1_24, %c1_25, %c0_26, %c0_27] : memref<2x2x2x4x256xf32, #tpu.memory_space<vmem>>, vector<2x1x1x4x128xf32>
    %36 = vector.shape_cast %35 : vector<2x1x1x4x128xf32> to vector<2x4x128xf32>
    %37 = vector.extract_strided_slice %0 {offsets = [4, 0, 0], sizes = [1, 4, 1], strides = [1, 1, 1]} : vector<9x4x1xf32> to vector<1x4x1xf32>
    %38 = vector.shape_cast %37 : vector<1x4x1xf32> to vector<4x1xf32>
    %39 = vector.shape_cast %38 : vector<4x1xf32> to vector<1x4x1xf32>
    %40 = vector.broadcast %39 : vector<1x4x1xf32> to vector<2x4x128xf32>
    %41 = arith.mulf %36, %40 : vector<2x4x128xf32>
    %42 = arith.addf %34, %41 : vector<2x4x128xf32>
    %c0_28 = arith.constant 0 : index
    %c1_29 = arith.constant 1 : index
    %c0_30 = arith.constant 0 : index
    %c0_31 = arith.constant 0 : index
    %c1_32 = arith.constant 1 : index
    %43 = vector.load %arg1[%c0_28, %c1_29, %c0_30, %c0_31, %c1_32] : memref<2x2x2x4x256xf32, #tpu.memory_space<vmem>>, vector<2x1x1x4x128xf32>
    %44 = vector.shape_cast %43 : vector<2x1x1x4x128xf32> to vector<2x4x128xf32>
    %45 = vector.extract_strided_slice %0 {offsets = [5, 0, 0], sizes = [1, 4, 1], strides = [1, 1, 1]} : vector<9x4x1xf32> to vector<1x4x1xf32>
    %46 = vector.shape_cast %45 : vector<1x4x1xf32> to vector<4x1xf32>
    %47 = vector.shape_cast %46 : vector<4x1xf32> to vector<1x4x1xf32>
    %48 = vector.broadcast %47 : vector<1x4x1xf32> to vector<2x4x128xf32>
    %49 = arith.mulf %44, %48 : vector<2x4x128xf32>
    %50 = arith.addf %42, %49 : vector<2x4x128xf32>
    %c0_33 = arith.constant 0 : index
    %c0_34 = arith.constant 0 : index
    %c0_35 = arith.constant 0 : index
    %c0_36 = arith.constant 0 : index
    %c8 = arith.constant 8 : index
    %51 = vector.load %arg1[%c0_33, %c0_34, %c0_35, %c0_36, %c8] : memref<2x2x2x4x256xf32, #tpu.memory_space<vmem>>, vector<2x1x1x4x128xf32>
    %52 = vector.shape_cast %51 : vector<2x1x1x4x128xf32> to vector<2x4x128xf32>
    %53 = vector.extract_strided_slice %0 {offsets = [6, 0, 0], sizes = [1, 4, 1], strides = [1, 1, 1]} : vector<9x4x1xf32> to vector<1x4x1xf32>
    %54 = vector.shape_cast %53 : vector<1x4x1xf32> to vector<4x1xf32>
    %55 = vector.shape_cast %54 : vector<4x1xf32> to vector<1x4x1xf32>
    %56 = vector.broadcast %55 : vector<1x4x1xf32> to vector<2x4x128xf32>
    %57 = arith.mulf %52, %56 : vector<2x4x128xf32>
    %58 = arith.addf %50, %57 : vector<2x4x128xf32>
    %c0_37 = arith.constant 0 : index
    %c0_38 = arith.constant 0 : index
    %c1_39 = arith.constant 1 : index
    %c0_40 = arith.constant 0 : index
    %c8_41 = arith.constant 8 : index
    %59 = vector.load %arg1[%c0_37, %c0_38, %c1_39, %c0_40, %c8_41] : memref<2x2x2x4x256xf32, #tpu.memory_space<vmem>>, vector<2x1x1x4x128xf32>
    %60 = vector.shape_cast %59 : vector<2x1x1x4x128xf32> to vector<2x4x128xf32>
    %61 = vector.extract_strided_slice %0 {offsets = [7, 0, 0], sizes = [1, 4, 1], strides = [1, 1, 1]} : vector<9x4x1xf32> to vector<1x4x1xf32>
    %62 = vector.shape_cast %61 : vector<1x4x1xf32> to vector<4x1xf32>
    %63 = vector.shape_cast %62 : vector<4x1xf32> to vector<1x4x1xf32>
    %64 = vector.broadcast %63 : vector<1x4x1xf32> to vector<2x4x128xf32>
    %65 = arith.mulf %60, %64 : vector<2x4x128xf32>
    %66 = arith.addf %58, %65 : vector<2x4x128xf32>
    %c0_42 = arith.constant 0 : index
    %c0_43 = arith.constant 0 : index
    %c0_44 = arith.constant 0 : index
    %c0_45 = arith.constant 0 : index
    %c9 = arith.constant 9 : index
    %67 = vector.load %arg1[%c0_42, %c0_43, %c0_44, %c0_45, %c9] : memref<2x2x2x4x256xf32, #tpu.memory_space<vmem>>, vector<2x1x1x4x128xf32>
    %68 = vector.shape_cast %67 : vector<2x1x1x4x128xf32> to vector<2x4x128xf32>
    %69 = vector.extract_strided_slice %0 {offsets = [8, 0, 0], sizes = [1, 4, 1], strides = [1, 1, 1]} : vector<9x4x1xf32> to vector<1x4x1xf32>
    %70 = vector.shape_cast %69 : vector<1x4x1xf32> to vector<4x1xf32>
    %71 = vector.shape_cast %70 : vector<4x1xf32> to vector<1x4x1xf32>
    %72 = vector.broadcast %71 : vector<1x4x1xf32> to vector<2x4x128xf32>
    %73 = arith.mulf %68, %72 : vector<2x4x128xf32>
    %74 = arith.addf %66, %73 : vector<2x4x128xf32>
    %75 = vector.extract_strided_slice %74 {offsets = [0, 0, 0], sizes = [1, 4, 128], strides = [1, 1, 1]} : vector<2x4x128xf32> to vector<1x4x128xf32>
    %76 = vector.shape_cast %75 : vector<1x4x128xf32> to vector<4x128xf32>
    %cst_46 = arith.constant dense<0.000000e+00> : vector<8x128xf32>
    %77 = tpu.matmul %1, %76, %cst_46 {dimension_numbers = #tpu.dot_dimension_numbers<[1], [0], [0], [1], [0, 0, 1, 1], [], []>} : vector<8x4xf32>, vector<4x128xf32>, vector<8x128xf32> -> vector<8x128xf32>
    %c0_47 = arith.constant 0 : index
    %c0_48 = arith.constant 0 : index
    %c0_49 = arith.constant 0 : index
    %78 = vector.load %arg4[%c0_47, %c0_48, %c0_49] : memref<2x8x128xf32, #tpu.memory_space<vmem>>, vector<1x8x128xf32>
    %79 = vector.shape_cast %78 : vector<1x8x128xf32> to vector<8x128xf32>
    %80 = vector.shape_cast %77 : vector<8x128xf32> to vector<1x8x128xf32>
    tpu.vector_store %arg4[%c0_47, %c0_48, %c0_49], %80 {strides = array<i32>} : memref<2x8x128xf32, #tpu.memory_space<vmem>>, vector<1x8x128xf32>,
    %81 = vector.extract_strided_slice %74 {offsets = [1, 0, 0], sizes = [1, 4, 128], strides = [1, 1, 1]} : vector<2x4x128xf32> to vector<1x4x128xf32>
    %82 = vector.shape_cast %81 : vector<1x4x128xf32> to vector<4x128xf32>
    %cst_50 = arith.constant dense<0.000000e+00> : vector<8x128xf32>
    %83 = tpu.matmul %1, %82, %cst_50 {dimension_numbers = #tpu.dot_dimension_numbers<[1], [0], [0], [1], [0, 0, 1, 1], [], []>} : vector<8x4xf32>, vector<4x128xf32>, vector<8x128xf32> -> vector<8x128xf32>
    %c1_51 = arith.constant 1 : index
    %c0_52 = arith.constant 0 : index
    %c0_53 = arith.constant 0 : index
    %84 = vector.load %arg4[%c1_51, %c0_52, %c0_53] : memref<2x8x128xf32, #tpu.memory_space<vmem>>, vector<1x8x128xf32>
    %85 = vector.shape_cast %84 : vector<1x8x128xf32> to vector<8x128xf32>
    %86 = vector.shape_cast %83 : vector<8x128xf32> to vector<1x8x128xf32>
    tpu.vector_store %arg4[%c1_51, %c0_52, %c0_53], %86 {strides = array<i32>} : memref<2x8x128xf32, #tpu.memory_space<vmem>>, vector<1x8x128xf32>,
    return
  }
  func.func @transform_0(%arg0: i32) -> (i32, i32, i32, i32, i32) {
    %c0_i32 = arith.constant 0 : i32
    %c0_i32_0 = arith.constant 0 : i32
    %c0_i32_1 = arith.constant 0 : i32
    %c0_i32_2 = arith.constant 0 : i32
    %c0_i32_3 = arith.constant 0 : i32
    return %arg0, %c0_i32, %c0_i32_0, %c0_i32_1, %c0_i32_2 : i32, i32, i32, i32, i32
  }
  func.func @transform_1(%arg0: i32) -> (i32, i32, i32) {
    %c0_i32 = arith.constant 0 : i32
    %c0_i32_0 = arith.constant 0 : i32
    %c0_i32_1 = arith.constant 0 : i32
    %c0_i32_2 = arith.constant 0 : i32
    return %c0_i32, %c0_i32_0, %c0_i32_1 : i32, i32, i32
  }
  func.func @transform_2(%arg0: i32) -> (i32, i32) {
    %c0_i32 = arith.constant 0 : i32
    %c0_i32_0 = arith.constant 0 : i32
    %c0_i32_1 = arith.constant 0 : i32
    return %c0_i32, %c0_i32_0 : i32, i32
  }
  func.func @transform_3(%arg0: i32) -> (i32, i32, i32) {
    %c0_i32 = arith.constant 0 : i32
    %c0_i32_0 = arith.constant 0 : i32
    %c0_i32_1 = arith.constant 0 : i32
    return %arg0, %c0_i32, %c0_i32_0 : i32, i32, i32
  }
}

</mosaic_0001>

<bundles_post_ra>
// kernel: tpu_custom_call.1
= control target key start
LH: loop header
LB: loop body
LE: loop exit
PB: predicated region body
PF: predicated region fallthrough
CT: control target
= control target key end

     0   :  { %8 = vsyncpa [#allocation3], 0  ;;  %s521_s0 = inlined_call_operand.hbm [shape: f32[2,2,2,4,256], index: 0, kind: input, shape index: {}]   ;;  %s522_s1 = inlined_call_operand.vmem [shape: f32[9,4,1], index: 1, kind: input, shape index: {}]   ;;  %s523_s2 = inlined_call_operand.vmem [shape: f32[8,4], index: 2, kind: input, shape index: {}]   ;;  %s524_s3 = inlined_call_operand.hbm [shape: f32[2,8,128], index: 3, kind: output, shape index: {}]  }
   0x1   :  { %9 = vsyncpa [#allocation4], 0  ;;  %s445_s12 = smov [#allocation2]  }
   0x2   :  { %s15_s13 = sshll.u32 %s445_s12, 4  ;;  %s16_s13 = int_to_ptr.vmem [resolvable:$true] %s15_s13 }
   0x3   :  { %s409_s14 = scalar_lea.vmem %s16_s13, 1024  ;;  %p414_p1 = scmp.lt.s32.totalorder %s16_s13, %s16_s13 }
   0x4   :  { %p410_p0 = scmp.ne.s32.totalorder %s16_s13, %s409_s14  ;;  %p415_p2 = scmp.lt.s32.totalorder %s409_s14, %s409_s14 }
   0x6   :  { %p416_p3 = por %p415_p2, %p414_p1 }
   0x8   :  { %p417_p4 = pnand %p416_p3, %p410_p0 }
   0xa   :  { %420 = shalt.err (!%p417_p4)
}
   0xb   :  { %s446_s15 = smov 128   ;;  %s447_s16 = smov 8  }
   0xc   :  { %21 = dma.hbm_to_vmem [thread:$0]  %s521_s0, 1024, %s16_s13, [#allocation3], %s446_s15, %s446_s15, %s447_s16  }
   0xd   :  { %441 = dma.done.wait [#allocation3], 1024  }
   0xe   :  { %442 = vsyncadd [#allocation3], 4294966272  ;;  %v448_v0 = vmov 0   ;;  %v35_v1 = vld [vmem:[%s522_s1 + $0x18] sm:$0xf]  ;;  %v62_v10 = vld [vmem:[#allocation2] sm:$0xff] }
   0xf   :  { %400 = vset.pattern.permute.xlu1 %v448_v0  ;;  %399 = vset.pattern.permute.xlu0 %v448_v0  ;;  %v31_v2 = vld [vmem:[%s522_s1 + $0x8] sm:$0xf]  ;;  %v36_v3 = vld [vmem:[%s522_s1 + $0x1c] sm:$0xf]  ;;  %v34_v4 = vld [vmem:[%s522_s1 + $0x14] sm:$0xf] }
  0x10   :  { %135 = vperm.xlu1 %400, %v35_v1   ;;  %66 = vperm.xlu0 %399, %v31_v2   ;;  %v37_v5 = vld [vmem:[%s522_s1 + $0x20] sm:$0xf]  ;;  %v30_v7 = vld [vmem:[%s522_s1 + $0x4] sm:$0xf]  ;;  %v32_v8 = vld [vmem:[%s522_s1 + $0xc] sm:$0xf] }
  0x11   :  { %v29_v6 = vld [vmem:[%s522_s1] sm:$0xf]  ;;  %v33_v9 = vld [vmem:[%s522_s1 + $0x10] sm:$0xf]  ;;  %s449_s9 = smov 127   ;;  %v155_v23 = vld [vmem:[#allocation2 + $0x8] sm:$0xff] }
  0x12   :  { %v63_v11 = vld [vmem:[#allocation2 + $0x20] sm:$0xff]  ;;  %v110_v15 = vld [vmem:[#allocation2 + $0x10] sm:$0xff]  ;;  %v156_v24 = vld [vmem:[#allocation2 + $0x28] sm:$0xff]  ;;  %s450_s1 = smov 120   ;;  %v451_v26 = vmov 0.0   ;;  %vm452_vm0 = vmmov 0  }
  0x13   :  { %v111_v16 = vld [vmem:[#allocation2 + $0x30] sm:$0xff]  ;;  %379 = vmatprep.subr.mxu0 %v451_v26  ;;  %384 = vmatprep.subr.mxu1 %v451_v26  ;;  %s453_s10 = smov 119   ;;  %v51_v34 = vld [vmem:[#allocation2 + $0x8] sm:$0xf]  ;;  %v39_v38 = vld [vmem:[#allocation2] sm:$0xf] }
  0x14   :  { %159 = vperm.xlu1 %400, %v36_v3   ;;  %114 = vperm.xlu0 %399, %v34_v4   ;;  %v52_v35 = vld [vmem:[#allocation2 + $0x28] sm:$0xf]  ;;  %v40_v39 = vld [vmem:[#allocation2 + $0x20] sm:$0xf]  ;;  %vm79_vm1 = vcmask 1039360   ;;  %vm148_vm2 = vcmask 982016  }
  0x15   :  { %381 = vmatprep.mubr.msk.f32.mxu0 %vm452_vm0, %v451_v26  ;;  %386 = vmatprep.mubr.msk.f32.mxu1 %vm452_vm0, %v451_v26  ;;  %v87_v46 = vld [vmem:[#allocation2 + $0x10] sm:$0xf]  ;;  %v99_v52 = vld [vmem:[#allocation2 + $0x18] sm:$0xf]  ;;  %vm193_vm3 = vcmask 973824   ;;  %vm204_vm4 = vcmask 1043456  }
  0x16   :  { %v88_v47 = vld [vmem:[#allocation2 + $0x30] sm:$0xf]  ;;  %v100_v53 = vld [vmem:[#allocation2 + $0x38] sm:$0xf]  ;;  %vm200_vm5 = vcmask 31744   ;;  %s454_s13 = smov [#allocation5]  }
  0x17   :  { %s359_s14 = sshll.u32 %s454_s13, 4  ;;  %s360_s14 = int_to_ptr.vmem [resolvable:$true] %s359_s14 }
  0x18   :  { %180 = vperm.xlu0 %399, %v37_v5   ;;  %43 = vperm.xlu1 %400, %v29_v6   ;;  %s421_s17 = scalar_lea.vmem %s360_s14, 256  ;;  %p426_p6 = scmp.lt.s32.totalorder %s360_s14, %s360_s14 }
  0x19   :  { %p422_p5 = scmp.ne.s32.totalorder %s360_s14, %s421_s17  ;;  %p427_p7 = scmp.lt.s32.totalorder %s421_s17, %s421_s17 }
  0x1b   :  { %p428_p8 = por %p427_p7, %p426_p6 }
  0x1c   :  { %55 = vperm.xlu0 %399, %v30_v7   ;;  %91 = vperm.xlu1 %400, %v32_v8  }
  0x1d   :  { %p429_p9 = pnand %p428_p8, %p422_p5 }
  0x20   :  { %103 = vperm.xlu0 %399, %v33_v9  }
  0x8b   :  { %v67_v12 = vpop.permute.xlu0 %66  ;;  %v136_v20 = vpop.permute.xlu1 %135 }
  0x8c   :  { %v69_v13 = vmul.f32 %v67_v12, %v62_v10  ;;  %v70_v14 = vmul.f32 %v67_v12, %v63_v11  ;;  %v138_v21 = vmul.f32 %v136_v20, %v62_v10  ;;  %v139_v22 = vmul.f32 %v136_v20, %v63_v11 }
  0x8e   :  { %73 = vrot.lane.b32.xlu0 %v69_v13, %s449_s9  ;;  %75 = vrot.lane.b32.xlu1 %v70_v14, %s449_s9 }
  0x8f   :  { %v115_v17 = vpop.permute.xlu0 %114  ;;  %v160_v25 = vpop.permute.xlu1 %159 }
  0x90   :  { %v117_v18 = vmul.f32 %v115_v17, %v110_v15  ;;  %v118_v19 = vmul.f32 %v115_v17, %v111_v16  ;;  %v162_v27 = vmul.f32 %v160_v25, %v155_v23  ;;  %v163_v28 = vmul.f32 %v160_v25, %v156_v24 }
  0x92   :  { %123 = vrot.lane.b32.xlu0 %v118_v19, %s449_s9  ;;  %121 = vrot.lane.b32.xlu1 %v117_v18, %s449_s9 }
  0x93   :  { %v181_v29 = vpop.permute.xlu0 %180  ;;  %v44_v32 = vpop.permute.xlu1 %43 }
  0x94   :  { %v183_v30 = vmul.f32 %v181_v29, %v62_v10  ;;  %v184_v31 = vmul.f32 %v181_v29, %v63_v11  ;;  %v46_v42 = vmul.f32 %v44_v32, %v39_v38  ;;  %v47_v43 = vmul.f32 %v44_v32, %v40_v39 }
  0x96   :  { %144 = vrot.lane.b32.xlu0 %v139_v22, %s450_s1  ;;  %142 = vrot.lane.b32.xlu1 %v138_v21, %s450_s1 }
  0x97   :  { %v56_v33 = vpop.permute.xlu0 %55  ;;  %v92_v36 = vpop.permute.xlu1 %91 }
  0x98   :  { %v58_v40 = vmul.f32 %v56_v33, %v51_v34  ;;  %v59_v41 = vmul.f32 %v56_v33, %v52_v35  ;;  %v94_v56 = vmul.f32 %v92_v36, %v87_v46  ;;  %v95_v57 = vmul.f32 %v92_v36, %v88_v47  ;;  %v38_v34 = vld [vmem:[%s523_s2] sm:$0xff] }
  0x9a   :  { %168 = vrot.lane.b32.xlu0 %v163_v28, %s450_s1  ;;  %166 = vrot.lane.b32.xlu1 %v162_v27, %s450_s1  ;;  %v60_v50 = vadd.f32 %v58_v40, %v46_v42  ;;  %v61_v51 = vadd.f32 %v59_v41, %v47_v43 }
  0x9b   :  { %v104_v37 = vpop.permute.xlu0 %103 }
  0x9c   :  { %v106_v62 = vmul.f32 %v104_v37, %v99_v52  ;;  %v107_v63 = vmul.f32 %v104_v37, %v100_v53 }
  0x9e   :  { %189 = vrot.lane.b32.xlu0 %v184_v31, %s453_s10  ;;  %187 = vrot.lane.b32.xlu1 %v183_v30, %s453_s10 }
 0x100   :  { %v74_v44 = vpop.permute.xlu0 %73  ;;  %v76_v45 = vpop.permute.xlu1 %75 }
 0x101   :  { %v77_v48 = vrot.slane %v74_v44, 4  ;;  %v78_v49 = vrot.slane %v76_v45, 4 }
 0x103   :  { %v80_v54 = vsel %vm79_vm1, %v74_v44, %v77_v48  ;;  %v81_v55 = vsel %vm79_vm1, %v76_v45, %v78_v49 }
 0x104   :  { %v84_v58 = vadd.f32 %v80_v54, %v60_v50  ;;  %v85_v59 = vadd.f32 %v81_v55, %v61_v51  ;;  %v124_v60 = vpop.permute.xlu0 %123  ;;  %v122_v61 = vpop.permute.xlu1 %121 }
 0x105   :  { %v126_v2 = vrot.slane %v124_v60, 4  ;;  %v125_v3 = vrot.slane %v122_v61, 4 }
 0x106   :  { %v96_v0 = vadd.f32 %v94_v56, %v84_v58  ;;  %v97_v1 = vadd.f32 %v95_v57, %v85_v59 }
 0x107   :  { %v128_v10 = vsel %vm79_vm1, %v124_v60, %v126_v2  ;;  %v127_v11 = vsel %vm79_vm1, %v122_v61, %v125_v3 }
 0x108   :  { %v109_v4 = vadd.f32 %v107_v63, %v97_v1  ;;  %v108_v5 = vadd.f32 %v106_v62, %v96_v0  ;;  %v145_v6 = vpop.permute.xlu0 %144  ;;  %v143_v7 = vpop.permute.xlu1 %142 }
 0x109   :  { %v147_v8 = vrot.slane %v145_v6, 4  ;;  %v146_v9 = vrot.slane %v143_v7, 4 }
 0x10a   :  { %v132_v12 = vadd.f32 %v128_v10, %v109_v4  ;;  %v131_v13 = vadd.f32 %v127_v11, %v108_v5 }
 0x10b   :  { %v150_v16 = vsel %vm148_vm2, %v145_v6, %v147_v8  ;;  %v149_v17 = vsel %vm148_vm2, %v143_v7, %v146_v9 }
 0x10c   :  { %v169_v14 = vpop.permute.xlu0 %168  ;;  %v167_v15 = vpop.permute.xlu1 %166  ;;  %v154_v22 = vadd.f32 %v150_v16, %v132_v12  ;;  %v153_v23 = vadd.f32 %v149_v17, %v131_v13 }
 0x10d   :  { %v171_v18 = vrot.slane %v169_v14, 4  ;;  %v170_v19 = vrot.slane %v167_v15, 4 }
 0x10f   :  { %v173_v20 = vsel %vm148_vm2, %v169_v14, %v171_v18  ;;  %v172_v21 = vsel %vm148_vm2, %v167_v15, %v170_v19 }
 0x110   :  { %v190_v24 = vpop.permute.xlu0 %189  ;;  %v188_v25 = vpop.permute.xlu1 %187  ;;  %v177_v28 = vadd.f32 %v173_v20, %v154_v22  ;;  %v176_v29 = vadd.f32 %v172_v21, %v153_v23 }
 0x111   :  { %v192_v26 = vrot.slane %v190_v24, 4  ;;  %v191_v27 = vrot.slane %v188_v25, 4 }
 0x113   :  { %v195_v30 = vsel %vm193_vm3, %v190_v24, %v192_v26  ;;  %v194_v31 = vsel %vm193_vm3, %v188_v25, %v191_v27 }
 0x114   :  { %v199_v32 = vadd.f32 %v195_v30, %v177_v28  ;;  %v198_v33 = vadd.f32 %v194_v31, %v176_v29 }
 0x116   :  { %380 = vmatpush3.msk.msra.mxu0 %vm204_vm4, %v198_v33  ;;  %385 = vmatpush3.msk.msra.mxu1 %vm204_vm4, %v199_v32 }
 0x117   :  { %382 = vmatmul.mubr.msk.f32.vlgmr.msra.gmra.mxu0 %vm200_vm5, %v38_v34  ;;  %387 = vmatmul.mubr.msk.f32.vlgmr.msra.gmra.mxu1 %vm200_vm5, %v38_v34 }
 0x1d7   :  { %v274_v35 = vpop.f32.mrf.mxu0  ;;  %v348_v36 = vpop.f32.mrf.mxu1 }
 0x1d8   :  { %278 = vst [vmem:[#allocation5] sm:$0xff] %v274_v35  ;;  %353 = vst [vmem:[#allocation5 + $0x8] sm:$0xff] %v348_v36 }
 0x1d9   :  { %v383_v37 = vpop.f32.mrf.mxu0  ;;  %v388_v38 = vpop.f32.mrf.mxu1 }
 0x1da   :  { %432 = shalt.err (!%p429_p9)
}
 0x1db   :  { %365 = dma.vmem_to_hbm [thread:$0]  %s360_s14, 256, %s524_s3, [#allocation4], %s446_s15, %s446_s15, %s447_s16  }
 0x1dc   :  { %443 = dma.done.wait [#allocation4], 256  }
 0x1dd   :  { %444 = vsyncadd [#allocation4], 4294967040 }
 0x1de   :  { %369 = vsyncpa [#allocation3], 1 }
 0x1df   :  { %370 = vsyncpa [#allocation4], 1 }

</bundles_post_ra>
